<compile_context>
chip_gen: v5e
topology: v5e:2x2
jax: 0.10.0
libtpu: 0.0.40
codegen_flags: <defaults>
</compile_context>

<pallas_src>
import jax
import jax.numpy as jnp
from jax.experimental import pallas as pl
from jax.experimental.pallas import tpu as pltpu


def _disc_kernel(x_ref, w1_ref, b1_ref, w2_ref, b2_ref, w3_ref, b3_ref, o_ref):
    # Layer 1: Linear(784 -> 256) + ReLU  (MXU, f32 accumulation)
    h1 = jnp.dot(x_ref[...], w1_ref[...], preferred_element_type=jnp.float32)
    h1 = jnp.maximum(h1 + b1_ref[...], 0.0)
    # Layer 2: Linear(256 -> 256) + ReLU  (MXU; cast activations to the weight
    # dtype so the bf16 path uses the fast MXU mode, no-op on the f32 path)
    h2 = jnp.dot(h1.astype(w2_ref.dtype), w2_ref[...],
                 preferred_element_type=jnp.float32)
    h2 = jnp.maximum(h2 + b2_ref[...], 0.0)
    # Layer 3: Linear(256 -> 1) + Sigmoid as VPU multiply + XLU lane-reduce
    # (avoids a padded 256x128 MXU matmul; these slots are idle anyway).
    logits = jnp.sum(h2 * w3_ref[...], axis=-1, keepdims=True) + b3_ref[...]
    o_ref[...] = jax.nn.sigmoid(logits).astype(o_ref.dtype)


def discriminator_forward(x, params, *, block_b=2048, use_bf16_matmul=False):
    """x: [B, 784] float32. Returns [B, 1] float32 (sigmoid probabilities)."""
    w1, b1, w2, b2, w3, b3 = params
    B, F = x.shape
    assert F == 784, f"expected 784 input features, got {F}"

    # Cheap 2-D views of the small params (biases / final weight stay f32).
    b1r = b1.reshape(1, 256).astype(jnp.float32)
    b2r = b2.reshape(1, 256).astype(jnp.float32)
    w3r = w3.reshape(1, 256).astype(jnp.float32)   # (256,1) -> row vector
    b3r = b3.reshape(1, 1).astype(jnp.float32)

    if use_bf16_matmul:
        # Stream x and the two big weights as bf16 (f32 accumulation in-kernel).
        x_in = x.astype(jnp.bfloat16)
        w1_in = w1.astype(jnp.bfloat16)
        w2_in = w2.astype(jnp.bfloat16)
    else:
        x_in, w1_in, w2_in = x, w1, w2

    # --- Batch tile selection -------------------------------------------------
    block_b = max(8, (block_b // 8) * 8)
    if 8 < B <= block_b:
        # Whole batch would fit in one tile: split into >=2 tiles so the
        # "parallel" grid axis actually feeds both TensorCores on v7x.
        TB = -(-B // 2)
    else:
        TB = min(block_b, B)
    TB = max(8, ((TB + 7) // 8) * 8)
    TB = min(TB, block_b)
    num_tiles = pl.cdiv(B, TB)   # ragged last tile handled by Pallas masking

    const2d = lambda i: (0, 0)   # weights/biases: same block every step -> resident

    out = pl.pallas_call(
        _disc_kernel,
        out_shape=jax.ShapeDtypeStruct((B, 1), jnp.float32),
        grid=(num_tiles,),
        in_specs=[
            pl.BlockSpec((TB, 784), lambda i: (i, 0)),   # x: batch-tiled
            pl.BlockSpec((784, 256), const2d),           # w1
            pl.BlockSpec((1, 256), const2d),             # b1
            pl.BlockSpec((256, 256), const2d),           # w2
            pl.BlockSpec((1, 256), const2d),             # b2
            pl.BlockSpec((1, 256), const2d),             # w3 (row vector)
            pl.BlockSpec((1, 1), const2d),               # b3
        ],
        out_specs=pl.BlockSpec((TB, 1), lambda i: (i, 0)),
        compiler_params=pltpu.CompilerParams(
            dimension_semantics=("parallel",),   # shard batch tiles across TCs
            vmem_limit_bytes=48 << 20,           # TB=2048 f32 working set ~28 MiB
        ),
    )(x_in, w1_in, b1r, w2_in, b2r, w3r, b3r)

    return out


def init_params(key):
    """Deterministic synthetic params, same shapes as the PyTorch module
    (stored as [in, out], i.e. transposed vs. torch's [out, in])."""
    k1, k2, k3, k4, k5, k6 = jax.random.split(key, 6)
    w1 = jax.random.normal(k1, (784, 256), jnp.float32) * 0.05
    b1 = jax.random.normal(k2, (256,), jnp.float32) * 0.05
    w2 = jax.random.normal(k3, (256, 256), jnp.float32) * 0.05
    b2 = jax.random.normal(k4, (256,), jnp.float32) * 0.05
    w3 = jax.random.normal(k5, (256, 1), jnp.float32) * 0.05
    b3 = jax.random.normal(k6, (1,), jnp.float32) * 0.05
    return (w1, b1, w2, b2, w3, b3)


def reference_forward(x, params):
    w1, b1, w2, b2, w3, b3 = params
    h1 = jnp.maximum(x @ w1 + b1, 0.0)
    h2 = jnp.maximum(h1 @ w2 + b2, 0.0)
    return jax.nn.sigmoid(h2 @ w3 + b3)


if __name__ == "__main__":
    key = jax.random.PRNGKey(0)
    kx, kx2, kp = jax.random.split(key, 3)
    params = init_params(kp)

    # 1) Small tile-aligned batch (single tile).
    B = 8
    x = jax.random.normal(kx, (B, 784), jnp.float32)
    out = jax.block_until_ready(discriminator_forward(x, params))
    ref = reference_forward(x, params)
    assert out.shape == (B, 1)
    assert jnp.allclose(out, ref, atol=1e-5, rtol=1e-5), (
        f"max abs diff {jnp.max(jnp.abs(out - ref))}"
    )

    # 2) Non-multiple-of-8 batch: exercises the ragged last tile (no jnp.pad)
    #    and the >=2-tile split (TB=16, tiles of 16 + 4 valid rows).
    B2 = 20
    x2 = jax.random.normal(kx2, (B2, 784), jnp.float32)
    out2 = jax.block_until_ready(discriminator_forward(x2, params))
    ref2 = reference_forward(x2, params)
    assert out2.shape == (B2, 1)
    assert jnp.allclose(out2, ref2, atol=1e-5, rtol=1e-5), (
        f"max abs diff {jnp.max(jnp.abs(out2 - ref2))}"
    )

    # 3) bf16 MXU/streaming path (looser tolerance: bf16 inputs, f32 accum).
    out3 = jax.block_until_ready(
        discriminator_forward(x2, params, use_bf16_matmul=True))
    assert out3.shape == (B2, 1)
    assert jnp.allclose(out3, ref2, atol=3e-2, rtol=3e-2), (
        f"bf16 path max abs diff {jnp.max(jnp.abs(out3 - ref2))}"
    )

    print("KERNEL_OK")
</pallas_src>

<mosaic_0001>
module attributes {stable_mosaic.version = 11 : i64} {
  func.func @_disc_kernel(%arg0: i32, %arg1: memref<8x784xf32, #tpu.memory_space<vmem>>, %arg2: memref<784x256xf32, #tpu.memory_space<vmem>>, %arg3: memref<1x256xf32, #tpu.memory_space<vmem>>, %arg4: memref<256x256xf32, #tpu.memory_space<vmem>>, %arg5: memref<1x256xf32, #tpu.memory_space<vmem>>, %arg6: memref<1x256xf32, #tpu.memory_space<vmem>>, %arg7: memref<1x1xf32, #tpu.memory_space<vmem>>, %arg8: memref<8x1xf32, #tpu.memory_space<vmem>>) attributes {dimension_semantics = [#tpu.dimension_semantics<parallel>], iteration_bounds = array<i64: 1>, scalar_prefetch = 0 : i64, scratch_operands = 0 : i64, tpu.core_type = #tpu.core_type<tc>, window_params = [{transform_indices = @transform_0, window_bounds = array<i64: 8, 784>}, {pipeline_mode = #tpu.pipeline_mode<synchronous>, transform_indices = @transform_1, window_bounds = array<i64: 784, 256>}, {pipeline_mode = #tpu.pipeline_mode<synchronous>, transform_indices = @transform_2, window_bounds = array<i64: 1, 256>}, {pipeline_mode = #tpu.pipeline_mode<synchronous>, transform_indices = @transform_3, window_bounds = array<i64: 256, 256>}, {pipeline_mode = #tpu.pipeline_mode<synchronous>, transform_indices = @transform_4, window_bounds = array<i64: 1, 256>}, {pipeline_mode = #tpu.pipeline_mode<synchronous>, transform_indices = @transform_5, window_bounds = array<i64: 1, 256>}, {pipeline_mode = #tpu.pipeline_mode<synchronous>, transform_indices = @transform_6, window_bounds = array<i64: 1, 1>}, {transform_indices = @transform_7, window_bounds = array<i64: 8, 1>}]} {
    %c0 = arith.constant 0 : index
    %c0_0 = arith.constant 0 : index
    %0 = vector.load %arg1[%c0, %c0_0] : memref<8x784xf32, #tpu.memory_space<vmem>>, vector<8x784xf32>
    %c0_1 = arith.constant 0 : index
    %c0_2 = arith.constant 0 : index
    %1 = vector.load %arg2[%c0_1, %c0_2] : memref<784x256xf32, #tpu.memory_space<vmem>>, vector<784x256xf32>
    %cst = arith.constant dense<0.000000e+00> : vector<8x256xf32>
    %2 = tpu.matmul %0, %1, %cst {dimension_numbers = #tpu.dot_dimension_numbers<[1], [0], [0], [1], [0, 0, 1, 1], [], []>} : vector<8x784xf32>, vector<784x256xf32>, vector<8x256xf32> -> vector<8x256xf32>
    %c0_3 = arith.constant 0 : index
    %c0_4 = arith.constant 0 : index
    %3 = vector.load %arg3[%c0_3, %c0_4] : memref<1x256xf32, #tpu.memory_space<vmem>>, vector<1x256xf32>
    %4 = vector.broadcast %3 : vector<1x256xf32> to vector<8x256xf32>
    %5 = arith.addf %2, %4 : vector<8x256xf32>
    %cst_5 = arith.constant 0.000000e+00 : f32
    %6 = vector.broadcast %cst_5 : f32 to vector<8x256xf32>
    %7 = arith.maximumf %5, %6 : vector<8x256xf32>
    %c0_6 = arith.constant 0 : index
    %c0_7 = arith.constant 0 : index
    %8 = vector.load %arg4[%c0_6, %c0_7] : memref<256x256xf32, #tpu.memory_space<vmem>>, vector<256x256xf32>
    %cst_8 = arith.constant dense<0.000000e+00> : vector<8x256xf32>
    %9 = tpu.matmul %7, %8, %cst_8 {dimension_numbers = #tpu.dot_dimension_numbers<[1], [0], [0], [1], [0, 0, 1, 1], [], []>} : vector<8x256xf32>, vector<256x256xf32>, vector<8x256xf32> -> vector<8x256xf32>
    %c0_9 = arith.constant 0 : index
    %c0_10 = arith.constant 0 : index
    %10 = vector.load %arg5[%c0_9, %c0_10] : memref<1x256xf32, #tpu.memory_space<vmem>>, vector<1x256xf32>
    %11 = vector.broadcast %10 : vector<1x256xf32> to vector<8x256xf32>
    %12 = arith.addf %9, %11 : vector<8x256xf32>
    %cst_11 = arith.constant 0.000000e+00 : f32
    %13 = vector.broadcast %cst_11 : f32 to vector<8x256xf32>
    %14 = arith.maximumf %12, %13 : vector<8x256xf32>
    %c0_12 = arith.constant 0 : index
    %c0_13 = arith.constant 0 : index
    %15 = vector.load %arg6[%c0_12, %c0_13] : memref<1x256xf32, #tpu.memory_space<vmem>>, vector<1x256xf32>
    %16 = vector.broadcast %15 : vector<1x256xf32> to vector<8x256xf32>
    %17 = arith.mulf %14, %16 : vector<8x256xf32>
    %cst_14 = arith.constant dense<0.000000e+00> : vector<8xf32>
    %18 = vector.multi_reduction <add>, %17, %cst_14 [1] : vector<8x256xf32> to vector<8xf32>
    %19 = vector.shape_cast %18 : vector<8xf32> to vector<8x1xf32>
    %c0_15 = arith.constant 0 : index
    %c0_16 = arith.constant 0 : index
    %20 = vector.load %arg7[%c0_15, %c0_16] : memref<1x1xf32, #tpu.memory_space<vmem>>, vector<1x1xf32>
    %21 = vector.broadcast %20 : vector<1x1xf32> to vector<8x1xf32>
    %22 = arith.addf %19, %21 : vector<8x1xf32>
    %23 = arith.negf %22 : vector<8x1xf32>
    %24 = math.exp %23 : vector<8x1xf32>
    %cst_17 = arith.constant 1.000000e+00 : f32
    %25 = vector.broadcast %cst_17 : f32 to vector<8x1xf32>
    %26 = arith.addf %25, %24 : vector<8x1xf32>
    %27 = arith.divf %25, %26 : vector<8x1xf32>
    %c0_18 = arith.constant 0 : index
    %c0_19 = arith.constant 0 : index
    %28 = vector.load %arg8[%c0_18, %c0_19] : memref<8x1xf32, #tpu.memory_space<vmem>>, vector<8x1xf32>
    tpu.vector_store %arg8[%c0_18, %c0_19], %27 {strides = array<i32>} : memref<8x1xf32, #tpu.memory_space<vmem>>, vector<8x1xf32>,
    return
  }
  func.func @transform_0(%arg0: i32) -> (i32, i32) {
    %c0_i32 = arith.constant 0 : i32
    %c0_i32_0 = arith.constant 0 : i32
    return %arg0, %c0_i32 : i32, i32
  }
  func.func @transform_1(%arg0: i32) -> (i32, i32) {
    %c0_i32 = arith.constant 0 : i32
    %c0_i32_0 = arith.constant 0 : i32
    %c0_i32_1 = arith.constant 0 : i32
    return %c0_i32, %c0_i32_0 : i32, i32
  }
  func.func @transform_2(%arg0: i32) -> (i32, i32) {
    %c0_i32 = arith.constant 0 : i32
    %c0_i32_0 = arith.constant 0 : i32
    %c0_i32_1 = arith.constant 0 : i32
    return %c0_i32, %c0_i32_0 : i32, i32
  }
  func.func @transform_3(%arg0: i32) -> (i32, i32) {
    %c0_i32 = arith.constant 0 : i32
    %c0_i32_0 = arith.constant 0 : i32
    %c0_i32_1 = arith.constant 0 : i32
    return %c0_i32, %c0_i32_0 : i32, i32
  }
  func.func @transform_4(%arg0: i32) -> (i32, i32) {
    %c0_i32 = arith.constant 0 : i32
    %c0_i32_0 = arith.constant 0 : i32
    %c0_i32_1 = arith.constant 0 : i32
    return %c0_i32, %c0_i32_0 : i32, i32
  }
  func.func @transform_5(%arg0: i32) -> (i32, i32) {
    %c0_i32 = arith.constant 0 : i32
    %c0_i32_0 = arith.constant 0 : i32
    %c0_i32_1 = arith.constant 0 : i32
    return %c0_i32, %c0_i32_0 : i32, i32
  }
  func.func @transform_6(%arg0: i32) -> (i32, i32) {
    %c0_i32 = arith.constant 0 : i32
    %c0_i32_0 = arith.constant 0 : i32
    %c0_i32_1 = arith.constant 0 : i32
    return %c0_i32, %c0_i32_0 : i32, i32
  }
  func.func @transform_7(%arg0: i32) -> (i32, i32) {
    %c0_i32 = arith.constant 0 : i32
    %c0_i32_0 = arith.constant 0 : i32
    return %arg0, %c0_i32 : i32, i32
  }
}

</mosaic_0001>

<bundles_post_ra>
// kernel: tpu_custom_call.1
= control target key start
LH: loop header
LB: loop body
LE: loop exit
PB: predicated region body
PF: predicated region fallthrough
CT: control target
= control target key end

     0   :  { %s955_s0 = inlined_call_operand.hbm [shape: f32[8,784], index: 0, kind: input, shape index: {}]   ;;  %s956_s1 = inlined_call_operand.hbm [shape: f32[784,256], index: 1, kind: input, shape index: {}]   ;;  %s957_s2 = inlined_call_operand.vmem [shape: f32[1,256], index: 2, kind: input, shape index: {}]   ;;  %s958_s3 = inlined_call_operand.hbm [shape: f32[256,256], index: 3, kind: input, shape index: {}]   ;;  %s959_s4 = inlined_call_operand.vmem [shape: f32[1,256], index: 4, kind: input, shape index: {}]   ;;  %s960_s5 = inlined_call_operand.vmem [shape: f32[1,256], index: 5, kind: input, shape index: {}]   ;;  %s961_s6 = inlined_call_operand.<no memory space> [shape: f32[1,1], index: 6, kind: input, shape index: {}]   ;;  %s962_s7 = inlined_call_operand.vmem [shape: f32[8,1], index: 7, kind: output, shape index: {}]  }
   0x1   :  { %v12_v0 = vstv %s961_s6 }
   0x2   :  { %13 = vst [vmem:[#allocation2] sm:$0x1] %v12_v0 }
   0x3   :  { %14 = vsyncpa [#allocation4], 0 }
   0x4   :  { %15 = vsyncpa [#allocation6], 0  ;;  %s31_s28 = sshll.u32 %s956_s1, 4  ;;  %s852_s29 = smov [#allocation5]   ;;  %s32_s28 = int_to_ptr.hbm [resolvable:$true] %s31_s28 }
   0x5   :  { %s33_s30 = sshll.u32 %s852_s29, 4  ;;  %s21_s10 = sshll.u32 %s955_s0, 4  ;;  %s34_s30 = int_to_ptr.vmem [resolvable:$true] %s33_s30  ;;  %s22_s10 = int_to_ptr.hbm [resolvable:$true] %s21_s10 }
   0x6   :  { %s853_s11 = smov 256   ;;  %s854_s12 = smov 16  }
   0x7   :  { %39 = dma.hbm_to_vmem [thread:$0]  %s32_s28, 25088, %s34_s30, [#allocation6], %s853_s11, %s853_s11, %s854_s12  }
   0x8   :  { %s855_s6 = smov [#allocation3]   ;;  %s46_s16 = sshll.u32 %s958_s3, 4  ;;  %s47_s16 = int_to_ptr.hbm [resolvable:$true] %s46_s16 }
   0x9   :  { %s23_s13 = sshll.u32 %s855_s6, 4  ;;  %s856_s1 = smov [#allocation7]   ;;  %s24_s13 = int_to_ptr.vmem [resolvable:$true] %s23_s13 }
   0xa   :  { %26 = dma.hbm_to_vmem [thread:$0]  %s22_s10, 896, %s24_s13, [#allocation4]  }
   0xb   :  { %s48_s17 = sshll.u32 %s856_s1, 4  ;;  %s49_s17 = int_to_ptr.vmem [resolvable:$true] %s48_s17 }
   0xc   :  { %54 = dma.hbm_to_vmem [thread:$0]  %s47_s16, 8192, %s49_s17, [#allocation6], %s853_s11, %s853_s11, %s854_s12  }
   0xd   :  { %848 = dma.done.wait [#allocation4], 896  }
   0xe   :  { %849 = vsyncadd [#allocation4], 4294966400 }
   0xf   :  { %850 = dma.done.wait [#allocation6], 33280  }
  0x10   :  { %851 = vsyncadd [#allocation6], 4294934016  ;;  %v110_v1 = vld [vmem:[#allocation5 + $0xf0] sm:$0xff]  ;;  %v108_v4 = vld [vmem:[#allocation5 + $0xe0] sm:$0xff]  ;;  %vm282_vm0 = vcmask 130048   ;;  %vm755_vm4 = vcmask 7168  }
  0x11   :  { %v174_v2 = vld [vmem:[#allocation5 + $0x2f0] sm:$0xff]  ;;  %286 = vmatpush.msra.mxu0 %v110_v1  ;;  %v172_v6 = vld [vmem:[#allocation5 + $0x2e0] sm:$0xff] }
  0x12   :  { %v206_v3 = vld [vmem:[#allocation5 + $0x3f0] sm:$0xff]  ;;  %326 = vmatpush.msra.mxu2 %v174_v2  ;;  %v204_v7 = vld [vmem:[#allocation5 + $0x3e0] sm:$0xff] }
  0x13   :  { %v142_v5 = vld [vmem:[#allocation5 + $0x1f0] sm:$0xff]  ;;  %346 = vmatpush.msra.mxu3 %v206_v3  ;;  %v140_v9 = vld [vmem:[#allocation5 + $0x1e0] sm:$0xff]  ;;  %287 = vmatpush.msra.mxu0 %v108_v4  ;;  %v111_v3 = vld [vmem:[#allocation5 + $0xf8] sm:$0xff] }
  0x14   :  { %306 = vmatpush.msra.mxu1 %v142_v5  ;;  %v106_v8 = vld [vmem:[#allocation5 + $0xd0] sm:$0xff]  ;;  %327 = vmatpush.msra.mxu2 %v172_v6  ;;  %v104_v12 = vld [vmem:[#allocation5 + $0xc0] sm:$0xff] }
  0x15   :  { %v170_v10 = vld [vmem:[#allocation5 + $0x2d0] sm:$0xff]  ;;  %347 = vmatpush.msra.mxu3 %v204_v7  ;;  %v168_v14 = vld [vmem:[#allocation5 + $0x2c0] sm:$0xff]  ;;  %288 = vmatpush.msra.mxu0 %v106_v8  ;;  %v909_v7 = vld [vmem:[#allocation3 + $0x10] sm:$0xff] }
  0x16   :  { %v202_v11 = vld [vmem:[#allocation5 + $0x3d0] sm:$0xff]  ;;  %307 = vmatpush.msra.mxu1 %v140_v9  ;;  %328 = vmatpush.msra.mxu2 %v170_v10  ;;  %v200_v15 = vld [vmem:[#allocation5 + $0x3c0] sm:$0xff]  ;;  %v109_v8 = vld [vmem:[#allocation5 + $0xe8] sm:$0xff] }
  0x17   :  { %v138_v13 = vld [vmem:[#allocation5 + $0x1d0] sm:$0xff]  ;;  %v136_v16 = vld [vmem:[#allocation5 + $0x1c0] sm:$0xff]  ;;  %348 = vmatpush.msra.mxu3 %v202_v11  ;;  %289 = vmatpush.msra.mxu0 %v104_v12  ;;  %v143_v9 = vld [vmem:[#allocation5 + $0x1f8] sm:$0xff] }
  0x18   :  { %308 = vmatpush.msra.mxu1 %v138_v13  ;;  %v102_v17 = vld [vmem:[#allocation5 + $0xb0] sm:$0xff]  ;;  %329 = vmatpush.msra.mxu2 %v168_v14  ;;  %v100_v21 = vld [vmem:[#allocation5 + $0xa0] sm:$0xff]  ;;  %v911_v12 = vld [vmem:[#allocation3] sm:$0xff] }
  0x19   :  { %v166_v18 = vld [vmem:[#allocation5 + $0x2b0] sm:$0xff]  ;;  %349 = vmatpush.msra.mxu3 %v200_v15  ;;  %v164_v22 = vld [vmem:[#allocation5 + $0x2a0] sm:$0xff]  ;;  %290 = vmatpush.msra.mxu0 %v102_v17  ;;  %v141_v14 = vld [vmem:[#allocation5 + $0x1e8] sm:$0xff] }
  0x1a   :  { %v198_v19 = vld [vmem:[#allocation5 + $0x3b0] sm:$0xff]  ;;  %309 = vmatpush.msra.mxu1 %v136_v16  ;;  %330 = vmatpush.msra.mxu2 %v166_v18  ;;  %v196_v23 = vld [vmem:[#allocation5 + $0x3a0] sm:$0xff]  ;;  %v107_v15 = vld [vmem:[#allocation5 + $0xd8] sm:$0xff] }
  0x1b   :  { %v134_v20 = vld [vmem:[#allocation5 + $0x1b0] sm:$0xff]  ;;  %v132_v24 = vld [vmem:[#allocation5 + $0x1a0] sm:$0xff]  ;;  %350 = vmatpush.msra.mxu3 %v198_v19  ;;  %291 = vmatpush.msra.mxu0 %v100_v21  ;;  %v139_v18 = vld [vmem:[#allocation5 + $0x1d8] sm:$0xff] }
  0x1c   :  { %310 = vmatpush.msra.mxu1 %v134_v20  ;;  %v98_v25 = vld [vmem:[#allocation5 + $0x90] sm:$0xff]  ;;  %331 = vmatpush.msra.mxu2 %v164_v22  ;;  %v96_v29 = vld [vmem:[#allocation5 + $0x80] sm:$0xff]  ;;  %v105_v20 = vld [vmem:[#allocation5 + $0xc8] sm:$0xff] }
  0x1d   :  { %v162_v26 = vld [vmem:[#allocation5 + $0x290] sm:$0xff]  ;;  %351 = vmatpush.msra.mxu3 %v196_v23  ;;  %v160_v30 = vld [vmem:[#allocation5 + $0x280] sm:$0xff]  ;;  %292 = vmatpush.msra.mxu0 %v98_v25  ;;  %v103_v23 = vld [vmem:[#allocation5 + $0xb8] sm:$0xff] }
  0x1e   :  { %v194_v27 = vld [vmem:[#allocation5 + $0x390] sm:$0xff]  ;;  %311 = vmatpush.msra.mxu1 %v132_v24  ;;  %332 = vmatpush.msra.mxu2 %v162_v26  ;;  %v192_v31 = vld [vmem:[#allocation5 + $0x380] sm:$0xff]  ;;  %v137_v24 = vld [vmem:[#allocation5 + $0x1c8] sm:$0xff] }
  0x1f   :  { %v130_v28 = vld [vmem:[#allocation5 + $0x190] sm:$0xff]  ;;  %v128_v32 = vld [vmem:[#allocation5 + $0x180] sm:$0xff]  ;;  %352 = vmatpush.msra.mxu3 %v194_v27  ;;  %293 = vmatpush.msra.mxu0 %v96_v29  ;;  %v101_v27 = vld [vmem:[#allocation5 + $0xa8] sm:$0xff] }
  0x20   :  { %312 = vmatpush.msra.mxu1 %v130_v28  ;;  %v94_v33 = vld [vmem:[#allocation5 + $0x70] sm:$0xff]  ;;  %333 = vmatpush.msra.mxu2 %v160_v30  ;;  %v92_v37 = vld [vmem:[#allocation5 + $0x60] sm:$0xff]  ;;  %v135_v28 = vld [vmem:[#allocation5 + $0x1b8] sm:$0xff] }
  0x21   :  { %v158_v34 = vld [vmem:[#allocation5 + $0x270] sm:$0xff]  ;;  %353 = vmatpush.msra.mxu3 %v192_v31  ;;  %v156_v38 = vld [vmem:[#allocation5 + $0x260] sm:$0xff]  ;;  %294 = vmatpush.msra.mxu0 %v94_v33  ;;  %v99_v31 = vld [vmem:[#allocation5 + $0x98] sm:$0xff] }
  0x22   :  { %v190_v35 = vld [vmem:[#allocation5 + $0x370] sm:$0xff]  ;;  %313 = vmatpush.msra.mxu1 %v128_v32  ;;  %334 = vmatpush.msra.mxu2 %v158_v34  ;;  %v188_v39 = vld [vmem:[#allocation5 + $0x360] sm:$0xff]  ;;  %v133_v32 = vld [vmem:[#allocation5 + $0x1a8] sm:$0xff] }
  0x23   :  { %v126_v36 = vld [vmem:[#allocation5 + $0x170] sm:$0xff]  ;;  %v124_v40 = vld [vmem:[#allocation5 + $0x160] sm:$0xff]  ;;  %354 = vmatpush.msra.mxu3 %v190_v35  ;;  %295 = vmatpush.msra.mxu0 %v92_v37  ;;  %v97_v35 = vld [vmem:[#allocation5 + $0x88] sm:$0xff] }
  0x24   :  { %314 = vmatpush.msra.mxu1 %v126_v36  ;;  %v90_v41 = vld [vmem:[#allocation5 + $0x50] sm:$0xff]  ;;  %335 = vmatpush.msra.mxu2 %v156_v38  ;;  %v88_v45 = vld [vmem:[#allocation5 + $0x40] sm:$0xff]  ;;  %v131_v36 = vld [vmem:[#allocation5 + $0x198] sm:$0xff] }
  0x25   :  { %v154_v42 = vld [vmem:[#allocation5 + $0x250] sm:$0xff]  ;;  %355 = vmatpush.msra.mxu3 %v188_v39  ;;  %v152_v46 = vld [vmem:[#allocation5 + $0x240] sm:$0xff]  ;;  %296 = vmatpush.msra.mxu0 %v90_v41  ;;  %v95_v39 = vld [vmem:[#allocation5 + $0x78] sm:$0xff] }
  0x26   :  { %v186_v43 = vld [vmem:[#allocation5 + $0x350] sm:$0xff]  ;;  %315 = vmatpush.msra.mxu1 %v124_v40  ;;  %336 = vmatpush.msra.mxu2 %v154_v42  ;;  %v184_v47 = vld [vmem:[#allocation5 + $0x340] sm:$0xff]  ;;  %v129_v40 = vld [vmem:[#allocation5 + $0x188] sm:$0xff] }
  0x27   :  { %v122_v44 = vld [vmem:[#allocation5 + $0x150] sm:$0xff]  ;;  %v120_v48 = vld [vmem:[#allocation5 + $0x140] sm:$0xff]  ;;  %356 = vmatpush.msra.mxu3 %v186_v43  ;;  %297 = vmatpush.msra.mxu0 %v88_v45  ;;  %v93_v43 = vld [vmem:[#allocation5 + $0x68] sm:$0xff] }
  0x28   :  { %316 = vmatpush.msra.mxu1 %v122_v44  ;;  %v86_v49 = vld [vmem:[#allocation5 + $0x30] sm:$0xff]  ;;  %337 = vmatpush.msra.mxu2 %v152_v46  ;;  %v84_v53 = vld [vmem:[#allocation5 + $0x20] sm:$0xff]  ;;  %v127_v44 = vld [vmem:[#allocation5 + $0x178] sm:$0xff] }
  0x29   :  { %v150_v50 = vld [vmem:[#allocation5 + $0x230] sm:$0xff]  ;;  %357 = vmatpush.msra.mxu3 %v184_v47  ;;  %v148_v54 = vld [vmem:[#allocation5 + $0x220] sm:$0xff]  ;;  %298 = vmatpush.msra.mxu0 %v86_v49  ;;  %v91_v47 = vld [vmem:[#allocation5 + $0x58] sm:$0xff] }
  0x2a   :  { %v182_v51 = vld [vmem:[#allocation5 + $0x330] sm:$0xff]  ;;  %317 = vmatpush.msra.mxu1 %v120_v48  ;;  %338 = vmatpush.msra.mxu2 %v150_v50  ;;  %v180_v55 = vld [vmem:[#allocation5 + $0x320] sm:$0xff]  ;;  %v125_v48 = vld [vmem:[#allocation5 + $0x168] sm:$0xff] }
  0x2b   :  { %v118_v52 = vld [vmem:[#allocation5 + $0x130] sm:$0xff]  ;;  %v116_v56 = vld [vmem:[#allocation5 + $0x120] sm:$0xff]  ;;  %358 = vmatpush.msra.mxu3 %v182_v51  ;;  %299 = vmatpush.msra.mxu0 %v84_v53  ;;  %v89_v51 = vld [vmem:[#allocation5 + $0x48] sm:$0xff] }
  0x2c   :  { %318 = vmatpush.msra.mxu1 %v118_v52  ;;  %v82_v57 = vld [vmem:[#allocation5 + $0x10] sm:$0xff]  ;;  %339 = vmatpush.msra.mxu2 %v148_v54  ;;  %v80_v61 = vld [vmem:[#allocation5] sm:$0xff]  ;;  %v123_v52 = vld [vmem:[#allocation5 + $0x158] sm:$0xff] }
  0x2d   :  { %v146_v58 = vld [vmem:[#allocation5 + $0x210] sm:$0xff]  ;;  %359 = vmatpush.msra.mxu3 %v180_v55  ;;  %v144_v62 = vld [vmem:[#allocation5 + $0x200] sm:$0xff]  ;;  %300 = vmatpush.msra.mxu0 %v82_v57  ;;  %v87_v55 = vld [vmem:[#allocation5 + $0x38] sm:$0xff] }
  0x2e   :  { %v178_v59 = vld [vmem:[#allocation5 + $0x310] sm:$0xff]  ;;  %319 = vmatpush.msra.mxu1 %v116_v56  ;;  %340 = vmatpush.msra.mxu2 %v146_v58  ;;  %v176_v63 = vld [vmem:[#allocation5 + $0x300] sm:$0xff]  ;;  %v121_v56 = vld [vmem:[#allocation5 + $0x148] sm:$0xff] }
  0x2f   :  { %v114_v60 = vld [vmem:[#allocation5 + $0x110] sm:$0xff]  ;;  %360 = vmatpush.msra.mxu3 %v178_v59  ;;  %v112_v2 = vld [vmem:[#allocation5 + $0x100] sm:$0xff]  ;;  %301 = vmatpush.msra.mxu0 %v80_v61  ;;  %v85_v59 = vld [vmem:[#allocation5 + $0x28] sm:$0xff] }
  0x30   :  { %v238_v0 = vld [vmem:[#allocation5 + $0x4f0] sm:$0xff]  ;;  %320 = vmatpush.msra.mxu1 %v114_v60  ;;  %341 = vmatpush.msra.mxu2 %v144_v62  ;;  %v236_v4 = vld [vmem:[#allocation5 + $0x4e0] sm:$0xff]  ;;  %v119_v60 = vld [vmem:[#allocation5 + $0x138] sm:$0xff] }
  0x31   :  { %v274_v1 = vld [vmem:[#allocation5 + $0x610] sm:$0xff]  ;;  %361 = vmatpush.msra.mxu3 %v176_v63  ;;  %366 = vmatpush.msrb.mxu0 %v238_v0  ;;  %v272_v6 = vld [vmem:[#allocation5 + $0x600] sm:$0xff]  ;;  %v921_v63 = vld [vmem:[#allocation3 + $0x30] sm:$0xff] }
  0x32   :  { %v270_v5 = vld [vmem:[#allocation5 + $0x5f0] sm:$0xff]  ;;  %420 = vmatpush.msrb.mxu2 %v274_v1  ;;  %321 = vmatpush.msra.mxu1 %v112_v2  ;;  %v268_v11 = vld [vmem:[#allocation5 + $0x5e0] sm:$0xff]  ;;  %v83_v0 = vld [vmem:[#allocation5 + $0x18] sm:$0xff] }
  0x33   :  { %426 = vmatpush.msrb.mxu3 %v111_v3  ;;  %367 = vmatpush.msrb.mxu0 %v236_v4  ;;  %v234_v10 = vld [vmem:[#allocation5 + $0x4d0] sm:$0xff]  ;;  %v914_v13 = vld [vmem:[#allocation3 + $0x18] sm:$0xff]  ;;  %v117_v1 = vld [vmem:[#allocation5 + $0x128] sm:$0xff] }
  0x34   :  { %386 = vmatpush.msrb.mxu1 %v270_v5  ;;  %421 = vmatpush.msrb.mxu2 %v272_v6  ;;  %v232_v16 = vld [vmem:[#allocation5 + $0x4c0] sm:$0xff]  ;;  %v266_v17 = vld [vmem:[#allocation5 + $0x5d0] sm:$0xff]  ;;  %v923_v4 = vld [vmem:[#allocation3 + $0x20] sm:$0xff] }
  0x35   :  { %342 = vmatmul.f32.vlgmr.msra.gmra.mxu2 %v909_v7  ;;  %427 = vmatpush.msrb.mxu3 %v109_v8  ;;  %v918_v19 = vld [vmem:[#allocation3 + $0x8] sm:$0xff]  ;;  %v264_v22 = vld [vmem:[#allocation5 + $0x5c0] sm:$0xff]  ;;  %v81_v5 = vld [vmem:[#allocation5 + $0x8] sm:$0xff] }
  0x36   :  { %446 = vmatpush.msra.mxu2 %v143_v9  ;;  %368 = vmatpush.msrb.mxu0 %v234_v10  ;;  %v230_v21 = vld [vmem:[#allocation5 + $0x4b0] sm:$0xff]  ;;  %v228_v25 = vld [vmem:[#allocation5 + $0x4a0] sm:$0xff]  ;;  %v115_v6 = vld [vmem:[#allocation5 + $0x118] sm:$0xff] }
  0x37   :  { %387 = vmatpush.msrb.mxu1 %v268_v11  ;;  %302 = vmatmul.f32.vlgmr.msra.gmra.mxu0 %v911_v12  ;;  %v262_v26 = vld [vmem:[#allocation5 + $0x5b0] sm:$0xff]  ;;  %v260_v30 = vld [vmem:[#allocation5 + $0x5a0] sm:$0xff]  ;;  %v239_v9 = vld [vmem:[#allocation5 + $0x4f8] sm:$0xff] }
  0x38   :  { %362 = vmatmul.f32.vlgmr.msra.gmra.mxu3 %v914_v13  ;;  %447 = vmatpush.msra.mxu2 %v141_v14  ;;  %v226_v29 = vld [vmem:[#allocation5 + $0x490] sm:$0xff]  ;;  %v224_v33 = vld [vmem:[#allocation5 + $0x480] sm:$0xff]  ;;  %v113_v11 = vld [vmem:[#allocation5 + $0x108] sm:$0xff] }
  0x39   :  { %428 = vmatpush.msrb.mxu3 %v107_v15  ;;  %369 = vmatpush.msrb.mxu0 %v232_v16  ;;  %v258_v34 = vld [vmem:[#allocation5 + $0x590] sm:$0xff]  ;;  %v256_v38 = vld [vmem:[#allocation5 + $0x580] sm:$0xff]  ;;  %v175_v14 = vld [vmem:[#allocation5 + $0x2f8] sm:$0xff] }
  0x3a   :  { %388 = vmatpush.msrb.mxu1 %v266_v17  ;;  %448 = vmatpush.msra.mxu2 %v139_v18  ;;  %v222_v37 = vld [vmem:[#allocation5 + $0x470] sm:$0xff]  ;;  %v220_v41 = vld [vmem:[#allocation5 + $0x460] sm:$0xff]  ;;  %v237_v15 = vld [vmem:[#allocation5 + $0x4e8] sm:$0xff] }
  0x3b   :  { %322 = vmatmul.f32.vlgmr.msra.gmra.mxu1 %v918_v19  ;;  %429 = vmatpush.msrb.mxu3 %v105_v20  ;;  %v254_v42 = vld [vmem:[#allocation5 + $0x570] sm:$0xff]  ;;  %v252_v46 = vld [vmem:[#allocation5 + $0x560] sm:$0xff]  ;;  %v271_v16 = vld [vmem:[#allocation5 + $0x5f8] sm:$0xff] }
  0x3c   :  { %370 = vmatpush.msrb.mxu0 %v230_v21  ;;  %389 = vmatpush.msrb.mxu1 %v264_v22  ;;  %v218_v45 = vld [vmem:[#allocation5 + $0x450] sm:$0xff]  ;;  %v216_v49 = vld [vmem:[#allocation5 + $0x440] sm:$0xff]  ;;  %v207_v17 = vld [vmem:[#allocation5 + $0x3f8] sm:$0xff] }
  0x3d   :  { %430 = vmatpush.msrb.mxu3 %v103_v23  ;;  %449 = vmatpush.msra.mxu2 %v137_v24  ;;  %v250_v50 = vld [vmem:[#allocation5 + $0x550] sm:$0xff]  ;;  %v248_v54 = vld [vmem:[#allocation5 + $0x540] sm:$0xff]  ;;  %v173_v18 = vld [vmem:[#allocation5 + $0x2e8] sm:$0xff] }
  0x3e   :  { %371 = vmatpush.msrb.mxu0 %v228_v25  ;;  %390 = vmatpush.msrb.mxu1 %v262_v26  ;;  %v214_v53 = vld [vmem:[#allocation5 + $0x430] sm:$0xff]  ;;  %v212_v57 = vld [vmem:[#allocation5 + $0x420] sm:$0xff]  ;;  %v235_v20 = vld [vmem:[#allocation5 + $0x4d8] sm:$0xff] }
  0x3f   :  { %431 = vmatpush.msrb.mxu3 %v101_v27  ;;  %450 = vmatpush.msra.mxu2 %v135_v28  ;;  %v246_v58 = vld [vmem:[#allocation5 + $0x530] sm:$0xff]  ;;  %v244_v62 = vld [vmem:[#allocation5 + $0x520] sm:$0xff]  ;;  %v269_v21 = vld [vmem:[#allocation5 + $0x5e8] sm:$0xff] }
  0x40   :  { %372 = vmatpush.msrb.mxu0 %v226_v29  ;;  %391 = vmatpush.msrb.mxu1 %v260_v30  ;;  %v210_v61 = vld [vmem:[#allocation5 + $0x410] sm:$0xff]  ;;  %v208_v2 = vld [vmem:[#allocation5 + $0x400] sm:$0xff]  ;;  %v205_v22 = vld [vmem:[#allocation5 + $0x3e8] sm:$0xff] }
  0x41   :  { %432 = vmatpush.msrb.mxu3 %v99_v31  ;;  %451 = vmatpush.msra.mxu2 %v133_v32  ;;  %v242_v3 = vld [vmem:[#allocation5 + $0x510] sm:$0xff]  ;;  %v240_v8 = vld [vmem:[#allocation5 + $0x500] sm:$0xff]  ;;  %v171_v23 = vld [vmem:[#allocation5 + $0x2d8] sm:$0xff] }
  0x42   :  { %373 = vmatpush.msrb.mxu0 %v224_v33  ;;  %392 = vmatpush.msrb.mxu1 %v258_v34  ;;  %v928_v10 = vld [vmem:[#allocation3 + $0x28] sm:$0xff]  ;;  %v233_v24 = vld [vmem:[#allocation5 + $0x4c8] sm:$0xff]  ;;  %v267_v25 = vld [vmem:[#allocation5 + $0x5d8] sm:$0xff] }
  0x43   :  { %433 = vmatpush.msrb.mxu3 %v97_v35  ;;  %452 = vmatpush.msra.mxu2 %v131_v36  ;;  %v203_v26 = vld [vmem:[#allocation5 + $0x3d8] sm:$0xff]  ;;  %v169_v27 = vld [vmem:[#allocation5 + $0x2c8] sm:$0xff] }
  0x44   :  { %374 = vmatpush.msrb.mxu0 %v222_v37  ;;  %393 = vmatpush.msrb.mxu1 %v256_v38  ;;  %v231_v28 = vld [vmem:[#allocation5 + $0x4b8] sm:$0xff]  ;;  %v265_v29 = vld [vmem:[#allocation5 + $0x5c8] sm:$0xff] }
  0x45   :  { %434 = vmatpush.msrb.mxu3 %v95_v39  ;;  %453 = vmatpush.msra.mxu2 %v129_v40  ;;  %v201_v30 = vld [vmem:[#allocation5 + $0x3c8] sm:$0xff]  ;;  %v167_v31 = vld [vmem:[#allocation5 + $0x2b8] sm:$0xff] }
  0x46   :  { %375 = vmatpush.msrb.mxu0 %v220_v41  ;;  %394 = vmatpush.msrb.mxu1 %v254_v42  ;;  %v229_v32 = vld [vmem:[#allocation5 + $0x4a8] sm:$0xff]  ;;  %v263_v33 = vld [vmem:[#allocation5 + $0x5b8] sm:$0xff] }
  0x47   :  { %435 = vmatpush.msrb.mxu3 %v93_v43  ;;  %454 = vmatpush.msra.mxu2 %v127_v44  ;;  %v199_v34 = vld [vmem:[#allocation5 + $0x3b8] sm:$0xff]  ;;  %v165_v35 = vld [vmem:[#allocation5 + $0x2a8] sm:$0xff] }
  0x48   :  { %376 = vmatpush.msrb.mxu0 %v218_v45  ;;  %395 = vmatpush.msrb.mxu1 %v252_v46  ;;  %v227_v36 = vld [vmem:[#allocation5 + $0x498] sm:$0xff]  ;;  %v261_v37 = vld [vmem:[#allocation5 + $0x5a8] sm:$0xff] }
  0x49   :  { %436 = vmatpush.msrb.mxu3 %v91_v47  ;;  %455 = vmatpush.msra.mxu2 %v125_v48  ;;  %v197_v38 = vld [vmem:[#allocation5 + $0x3a8] sm:$0xff]  ;;  %v163_v39 = vld [vmem:[#allocation5 + $0x298] sm:$0xff] }
  0x4a   :  { %377 = vmatpush.msrb.mxu0 %v216_v49  ;;  %396 = vmatpush.msrb.mxu1 %v250_v50  ;;  %v225_v40 = vld [vmem:[#allocation5 + $0x488] sm:$0xff]  ;;  %v259_v41 = vld [vmem:[#allocation5 + $0x598] sm:$0xff] }
  0x4b   :  { %437 = vmatpush.msrb.mxu3 %v89_v51  ;;  %456 = vmatpush.msra.mxu2 %v123_v52  ;;  %v195_v42 = vld [vmem:[#allocation5 + $0x398] sm:$0xff]  ;;  %v161_v43 = vld [vmem:[#allocation5 + $0x288] sm:$0xff] }
  0x4c   :  { %378 = vmatpush.msrb.mxu0 %v214_v53  ;;  %397 = vmatpush.msrb.mxu1 %v248_v54  ;;  %v223_v44 = vld [vmem:[#allocation5 + $0x478] sm:$0xff]  ;;  %v257_v45 = vld [vmem:[#allocation5 + $0x588] sm:$0xff] }
  0x4d   :  { %438 = vmatpush.msrb.mxu3 %v87_v55  ;;  %457 = vmatpush.msra.mxu2 %v121_v56  ;;  %v193_v46 = vld [vmem:[#allocation5 + $0x388] sm:$0xff]  ;;  %v159_v47 = vld [vmem:[#allocation5 + $0x278] sm:$0xff] }
  0x4e   :  { %379 = vmatpush.msrb.mxu0 %v212_v57  ;;  %398 = vmatpush.msrb.mxu1 %v246_v58  ;;  %v221_v48 = vld [vmem:[#allocation5 + $0x468] sm:$0xff]  ;;  %v255_v49 = vld [vmem:[#allocation5 + $0x578] sm:$0xff] }
  0x4f   :  { %439 = vmatpush.msrb.mxu3 %v85_v59  ;;  %458 = vmatpush.msra.mxu2 %v119_v60  ;;  %v191_v50 = vld [vmem:[#allocation5 + $0x378] sm:$0xff]  ;;  %v157_v51 = vld [vmem:[#allocation5 + $0x268] sm:$0xff] }
  0x50   :  { %380 = vmatpush.msrb.mxu0 %v210_v61  ;;  %399 = vmatpush.msrb.mxu1 %v244_v62  ;;  %v219_v52 = vld [vmem:[#allocation5 + $0x458] sm:$0xff]  ;;  %v253_v53 = vld [vmem:[#allocation5 + $0x568] sm:$0xff] }
  0x51   :  { %763 = vmatmul.msk.f32.vlgmr.msrb.gmra.mxu2 %vm282_vm0, %v921_v63  ;;  %440 = vmatpush.msrb.mxu3 %v83_v0  ;;  %v189_v54 = vld [vmem:[#allocation5 + $0x368] sm:$0xff]  ;;  %v155_v55 = vld [vmem:[#allocation5 + $0x258] sm:$0xff] }
  0x52   :  { %459 = vmatpush.msra.mxu2 %v117_v1  ;;  %381 = vmatpush.msrb.mxu0 %v208_v2  ;;  %v217_v56 = vld [vmem:[#allocation5 + $0x448] sm:$0xff]  ;;  %v251_v57 = vld [vmem:[#allocation5 + $0x558] sm:$0xff] }
  0x53   :  { %400 = vmatpush.msrb.mxu1 %v242_v3  ;;  %382 = vmatmul.f32.vlgmr.msrb.gmra.mxu0 %v923_v4  ;;  %v153_v58 = vld [vmem:[#allocation5 + $0x248] sm:$0xff]  ;;  %v187_v59 = vld [vmem:[#allocation5 + $0x358] sm:$0xff] }
  0x54   :  { %441 = vmatpush.msrb.mxu3 %v81_v5  ;;  %460 = vmatpush.msra.mxu2 %v115_v6  ;;  %v215_v60 = vld [vmem:[#allocation5 + $0x438] sm:$0xff]  ;;  %v249_v61 = vld [vmem:[#allocation5 + $0x548] sm:$0xff] }
  0x55   :  { %401 = vmatpush.msrb.mxu1 %v240_v8  ;;  %466 = vmatpush.msra.mxu0 %v175_v14  ;;  %v151_v62 = vld [vmem:[#allocation5 + $0x238] sm:$0xff]  ;;  %v185_v0 = vld [vmem:[#allocation5 + $0x348] sm:$0xff] }
  0x56   :  { %506 = vmatpush.msra.mxu3 %v239_v9  ;;  %402 = vmatmul.f32.vlgmr.msrb.gmra.mxu1 %v928_v10  ;;  %v213_v1 = vld [vmem:[#allocation5 + $0x428] sm:$0xff]  ;;  %v247_v2 = vld [vmem:[#allocation5 + $0x538] sm:$0xff] }
  0x57   :  { %461 = vmatpush.msra.mxu2 %v113_v11  ;;  %486 = vmatpush.msra.mxu1 %v207_v17  ;;  %v149_v3 = vld [vmem:[#allocation5 + $0x228] sm:$0xff]  ;;  %v183_v5 = vld [vmem:[#allocation5 + $0x338] sm:$0xff] }
  0x58   :  { %507 = vmatpush.msra.mxu3 %v237_v15  ;;  %467 = vmatpush.msra.mxu0 %v173_v18  ;;  %v211_v6 = vld [vmem:[#allocation5 + $0x418] sm:$0xff]  ;;  %v245_v8 = vld [vmem:[#allocation5 + $0x528] sm:$0xff] }
  0x59   :  { %526 = vmatpush.msrb.mxu2 %v271_v16  ;;  %487 = vmatpush.msra.mxu1 %v205_v22  ;;  %v147_v9 = vld [vmem:[#allocation5 + $0x218] sm:$0xff]  ;;  %v209_v11 = vld [vmem:[#allocation5 + $0x408] sm:$0xff]  ;;  %v596_v22 = vld [vmem:[#allocation7 + $0xe0] sm:$0xff] }
  0x5a   :  { %508 = vmatpush.msra.mxu3 %v235_v20  ;;  %468 = vmatpush.msra.mxu0 %v171_v23  ;;  %v243_v14 = vld [vmem:[#allocation5 + $0x518] sm:$0xff]  ;;  %v145_v15 = vld [vmem:[#allocation5 + $0x208] sm:$0xff] }
  0x5b   :  { %527 = vmatpush.msrb.mxu2 %v269_v21  ;;  %488 = vmatpush.msra.mxu1 %v203_v26  ;;  %v179_v16 = vld [vmem:[#allocation5 + $0x318] sm:$0xff]  ;;  %v177_v18 = vld [vmem:[#allocation5 + $0x308] sm:$0xff]  ;;  %v598_v21 = vld [vmem:[#allocation7 + $0xf0] sm:$0xff] }
  0x5c   :  { %509 = vmatpush.msra.mxu3 %v233_v24  ;;  %469 = vmatpush.msra.mxu0 %v169_v27  ;;  %v275_v17 = vld [vmem:[#allocation5 + $0x618] sm:$0xff]  ;;  %v273_v20 = vld [vmem:[#allocation5 + $0x608] sm:$0xff]  ;;  %v594_v24 = vld [vmem:[#allocation7 + $0xd0] sm:$0xff] }
  0x5d   :  { %528 = vmatpush.msrb.mxu2 %v267_v25  ;;  %489 = vmatpush.msra.mxu1 %v201_v30  ;;  %v597_v23 = vld [vmem:[#allocation7 + $0xe8] sm:$0xff]  ;;  %v592_v25 = vld [vmem:[#allocation7 + $0xc0] sm:$0xff]  ;;  %v590_v26 = vld [vmem:[#allocation7 + $0xb0] sm:$0xff] }
  0x5e   :  { %510 = vmatpush.msra.mxu3 %v231_v28  ;;  %470 = vmatpush.msra.mxu0 %v167_v31  ;;  %v588_v27 = vld [vmem:[#allocation7 + $0xa0] sm:$0xff]  ;;  %v586_v28 = vld [vmem:[#allocation7 + $0x90] sm:$0xff]  ;;  %v585_v31 = vld [vmem:[#allocation7 + $0x88] sm:$0xff] }
  0x5f   :  { %529 = vmatpush.msrb.mxu2 %v265_v29  ;;  %490 = vmatpush.msra.mxu1 %v199_v34  ;;  %v587_v29 = vld [vmem:[#allocation7 + $0x98] sm:$0xff]  ;;  %v584_v30 = vld [vmem:[#allocation7 + $0x80] sm:$0xff] }
  0x60   :  { %511 = vmatpush.msra.mxu3 %v229_v32  ;;  %471 = vmatpush.msra.mxu0 %v165_v35  ;;  %v582_v32 = vld [vmem:[#allocation7 + $0x70] sm:$0xff]  ;;  %v580_v34 = vld [vmem:[#allocation7 + $0x60] sm:$0xff]  ;;  %v581_v35 = vld [vmem:[#allocation7 + $0x68] sm:$0xff] }
  0x61   :  { %530 = vmatpush.msrb.mxu2 %v263_v33  ;;  %491 = vmatpush.msra.mxu1 %v197_v38  ;;  %v583_v33 = vld [vmem:[#allocation7 + $0x78] sm:$0xff]  ;;  %v576_v38 = vld [vmem:[#allocation7 + $0x40] sm:$0xff] }
  0x62   :  { %512 = vmatpush.msra.mxu3 %v227_v36  ;;  %472 = vmatpush.msra.mxu0 %v163_v39  ;;  %v578_v36 = vld [vmem:[#allocation7 + $0x50] sm:$0xff]  ;;  %v577_v39 = vld [vmem:[#allocation7 + $0x48] sm:$0xff] }
  0x63   :  { %531 = vmatpush.msrb.mxu2 %v261_v37  ;;  %492 = vmatpush.msra.mxu1 %v195_v42  ;;  %v579_v37 = vld [vmem:[#allocation7 + $0x58] sm:$0xff]  ;;  %v572_v42 = vld [vmem:[#allocation7 + $0x20] sm:$0xff] }
  0x64   :  { %513 = vmatpush.msra.mxu3 %v225_v40  ;;  %473 = vmatpush.msra.mxu0 %v161_v43  ;;  %v574_v40 = vld [vmem:[#allocation7 + $0x30] sm:$0xff]  ;;  %v573_v43 = vld [vmem:[#allocation7 + $0x28] sm:$0xff] }
  0x65   :  { %532 = vmatpush.msrb.mxu2 %v259_v41  ;;  %493 = vmatpush.msra.mxu1 %v193_v46  ;;  %v575_v41 = vld [vmem:[#allocation7 + $0x38] sm:$0xff]  ;;  %v568_v46 = vld [vmem:[#allocation7] sm:$0xff] }
  0x66   :  { %514 = vmatpush.msra.mxu3 %v223_v44  ;;  %474 = vmatpush.msra.mxu0 %v159_v47  ;;  %v570_v44 = vld [vmem:[#allocation7 + $0x10] sm:$0xff]  ;;  %v569_v47 = vld [vmem:[#allocation7 + $0x8] sm:$0xff] }
  0x67   :  { %533 = vmatpush.msrb.mxu2 %v257_v45  ;;  %494 = vmatpush.msra.mxu1 %v191_v50  ;;  %v571_v45 = vld [vmem:[#allocation7 + $0x18] sm:$0xff]  ;;  %v628_v50 = vld [vmem:[#allocation7 + $0x1e0] sm:$0xff] }
  0x68   :  { %515 = vmatpush.msra.mxu3 %v221_v48  ;;  %475 = vmatpush.msra.mxu0 %v157_v51  ;;  %v630_v48 = vld [vmem:[#allocation7 + $0x1f0] sm:$0xff]  ;;  %v629_v51 = vld [vmem:[#allocation7 + $0x1e8] sm:$0xff] }
  0x69   :  { %534 = vmatpush.msrb.mxu2 %v255_v49  ;;  %495 = vmatpush.msra.mxu1 %v189_v54  ;;  %v631_v49 = vld [vmem:[#allocation7 + $0x1f8] sm:$0xff] }
  0x6a   :  { %516 = vmatpush.msra.mxu3 %v219_v52  ;;  %476 = vmatpush.msra.mxu0 %v155_v55  ;;  %v942_v52 = vld [vmem:[%s957_s2] sm:$0x3]  ;;  %v627_v54 = vld [vmem:[#allocation7 + $0x1d8] sm:$0xff] }
  0x6b   :  { %535 = vmatpush.msrb.mxu2 %v253_v53  ;;  %442 = vmatmul.f32.vlgmr.msrb.gmra.mxu3 %v911_v12  ;;  %v181_v12 = vld [vmem:[#allocation5 + $0x328] sm:$0xff]  ;;  %v626_v53 = vld [vmem:[#allocation7 + $0x1d0] sm:$0xff]  ;;  %v278_v55 = vperm.slane %v942_v52, 0 }
  0x6c   :  { %517 = vmatpush.msra.mxu3 %v217_v56  ;;  %477 = vmatpush.msra.mxu0 %v153_v58  ;;  %v624_v56 = vld [vmem:[#allocation7 + $0x1c0] sm:$0xff] }
  0x6d   :  { %536 = vmatpush.msrb.mxu2 %v251_v57  ;;  %496 = vmatpush.msra.mxu1 %v187_v59  ;;  %v625_v57 = vld [vmem:[#allocation7 + $0x1c8] sm:$0xff]  ;;  %v622_v59 = vld [vmem:[#allocation7 + $0x1b0] sm:$0xff] }
  0x6e   :  { %518 = vmatpush.msra.mxu3 %v215_v60  ;;  %462 = vmatmul.f32.vlgmr.msra.gmra.mxu2 %v918_v19  ;;  %v241_v19 = vld [vmem:[#allocation5 + $0x508] sm:$0xff]  ;;  %v623_v60 = vld [vmem:[#allocation7 + $0x1b8] sm:$0xff] }
  0x6f   :  { %537 = vmatpush.msrb.mxu2 %v249_v61  ;;  %478 = vmatpush.msra.mxu0 %v151_v62  ;;  %v620_v62 = vld [vmem:[#allocation7 + $0x1a0] sm:$0xff] }
  0x70   :  { %497 = vmatpush.msra.mxu1 %v185_v0  ;;  %519 = vmatpush.msra.mxu3 %v213_v1  ;;  %v621_v0 = vld [vmem:[#allocation7 + $0x1a8] sm:$0xff] }
  0x71   :  { %538 = vmatpush.msrb.mxu2 %v247_v2  ;;  %479 = vmatpush.msra.mxu0 %v149_v3  ;;  %v618_v2 = vld [vmem:[#allocation7 + $0x190] sm:$0xff]  ;;  %v619_v3 = vld [vmem:[#allocation7 + $0x198] sm:$0xff] }
  0x72   :  { %498 = vmatpush.msra.mxu1 %v183_v5  ;;  %520 = vmatpush.msra.mxu3 %v211_v6 }
  0x73   :  { %539 = vmatpush.msrb.mxu2 %v245_v8  ;;  %480 = vmatpush.msra.mxu0 %v147_v9 }
  0x74   :  { %499 = vmatpush.msra.mxu1 %v181_v12  ;;  %521 = vmatpush.msra.mxu3 %v209_v11 }
  0x75   :  { %540 = vmatpush.msrb.mxu2 %v243_v14  ;;  %522 = vmatmul.f32.vlgmr.msra.gmra.mxu3 %v923_v4  ;;  %v599_v4 = vld [vmem:[#allocation7 + $0xf8] sm:$0xff]  ;;  %v616_v14 = vld [vmem:[#allocation7 + $0x180] sm:$0xff] }
  0x76   :  { %481 = vmatpush.msra.mxu0 %v145_v15  ;;  %500 = vmatpush.msra.mxu1 %v179_v16  ;;  %v617_v15 = vld [vmem:[#allocation7 + $0x188] sm:$0xff] }
  0x77   :  { %541 = vmatpush.msrb.mxu2 %v241_v19  ;;  %482 = vmatmul.f32.vlgmr.msra.gmra.mxu0 %v909_v7  ;;  %v595_v7 = vld [vmem:[#allocation7 + $0xd8] sm:$0xff]  ;;  %v614_v19 = vld [vmem:[#allocation7 + $0x170] sm:$0xff] }
  0x78   :  { %542 = vmatmul.f32.vlgmr.msrb.gmra.mxu2 %v928_v10  ;;  %560 = vmatpush.msrb.mxu0 %v275_v17  ;;  %v593_v10 = vld [vmem:[#allocation7 + $0xc8] sm:$0xff]  ;;  %v615_v17 = vld [vmem:[#allocation7 + $0x178] sm:$0xff] }
  0x79   :  { %501 = vmatpush.msra.mxu1 %v177_v18  ;;  %658 = vmatpush.msrb.mxu3 %v630_v48 }
  0x7a   :  { %502 = vmatmul.f32.vlgmr.msra.gmra.mxu1 %v914_v13  ;;  %561 = vmatpush.msrb.mxu0 %v273_v20  ;;  %v591_v13 = vld [vmem:[#allocation7 + $0xb8] sm:$0xff] }
  0x7b   :  { %638 = vmatpush.msrb.mxu1 %v598_v21  ;;  %698 = vmatpush.msra.mxu2 %v631_v49  ;;  %v632_v49 = vld [vmem:[%s959_s4] sm:$0x3] }
  0x7c   :  { %678 = vmatpush.msra.mxu0 %v599_v4  ;;  %659 = vmatpush.msrb.mxu3 %v628_v50  ;;  %v612_v4 = vld [vmem:[#allocation7 + $0x160] sm:$0xff]  ;;  %v634_v50 = vperm.slane %v632_v49, 0 }
  0x7d   :  { %639 = vmatpush.msrb.mxu1 %v596_v22  ;;  %699 = vmatpush.msra.mxu2 %v629_v51  ;;  %v613_v22 = vld [vmem:[#allocation7 + $0x168] sm:$0xff]  ;;  %v635_v51 = vperm.slane %v632_v49, 1 }
  0x7e   :  { %679 = vmatpush.msra.mxu0 %v597_v23  ;;  %660 = vmatpush.msrb.mxu3 %v626_v53 }
  0x7f   :  { %764 = vmatmul.msk.f32.vlgmr.msrb.gmra.mxu0 %vm282_vm0, %v921_v63  ;;  %640 = vmatpush.msrb.mxu1 %v594_v24  ;;  %v589_v63 = vld [vmem:[#allocation7 + $0xa8] sm:$0xff]  ;;  %v610_v24 = vld [vmem:[#allocation7 + $0x150] sm:$0xff] }
  0x80   :  { %680 = vmatpush.msra.mxu0 %v595_v7  ;;  %700 = vmatpush.msra.mxu2 %v627_v54  ;;  %v611_v7 = vld [vmem:[#allocation7 + $0x158] sm:$0xff]  ;;  %v720_v54 = vld [vmem:[%s960_s5] sm:$0x3] }
  0x81   :  { %641 = vmatpush.msrb.mxu1 %v592_v25  ;;  %661 = vmatpush.msrb.mxu3 %v624_v56 }
  0x82   :  { %681 = vmatpush.msra.mxu0 %v593_v10  ;;  %701 = vmatpush.msra.mxu2 %v625_v57  ;;  %v608_v10 = vld [vmem:[#allocation7 + $0x140] sm:$0xff] }
  0x83   :  { %642 = vmatpush.msrb.mxu1 %v590_v26  ;;  %662 = vmatpush.msrb.mxu3 %v622_v59  ;;  %v609_v26 = vld [vmem:[#allocation7 + $0x148] sm:$0xff] }
  0x84   :  { %682 = vmatpush.msra.mxu0 %v591_v13  ;;  %702 = vmatpush.msra.mxu2 %v623_v60  ;;  %v606_v13 = vld [vmem:[#allocation7 + $0x130] sm:$0xff] }
  0x85   :  { %643 = vmatpush.msrb.mxu1 %v588_v27  ;;  %663 = vmatpush.msrb.mxu3 %v620_v62  ;;  %v607_v27 = vld [vmem:[#allocation7 + $0x138] sm:$0xff]  ;;  %v723_v62 = vperm.slane %v720_v54, 1 }
  0x86   :  { %683 = vmatpush.msra.mxu0 %v589_v63  ;;  %703 = vmatpush.msra.mxu2 %v621_v0  ;;  %v604_v63 = vld [vmem:[#allocation7 + $0x120] sm:$0xff] }
  0x87   :  { %644 = vmatpush.msrb.mxu1 %v586_v28  ;;  %664 = vmatpush.msrb.mxu3 %v618_v2  ;;  %v605_v28 = vld [vmem:[#allocation7 + $0x128] sm:$0xff] }
  0x88   :  { %684 = vmatpush.msra.mxu0 %v587_v29  ;;  %704 = vmatpush.msra.mxu2 %v619_v3  ;;  %v602_v29 = vld [vmem:[#allocation7 + $0x110] sm:$0xff] }
  0x89   :  { %645 = vmatpush.msrb.mxu1 %v584_v30  ;;  %665 = vmatpush.msrb.mxu3 %v616_v14  ;;  %v603_v30 = vld [vmem:[#allocation7 + $0x118] sm:$0xff] }
  0x8a   :  { %685 = vmatpush.msra.mxu0 %v585_v31  ;;  %705 = vmatpush.msra.mxu2 %v617_v15  ;;  %v600_v31 = vld [vmem:[#allocation7 + $0x100] sm:$0xff] }
  0x8b   :  { %646 = vmatpush.msrb.mxu1 %v582_v32  ;;  %666 = vmatpush.msrb.mxu3 %v614_v19  ;;  %v601_v32 = vld [vmem:[#allocation7 + $0x108] sm:$0xff] }
  0x8c   :  { %686 = vmatpush.msra.mxu0 %v583_v33  ;;  %706 = vmatpush.msra.mxu2 %v615_v17  ;;  %v279_v33 = vperm.slane %v942_v52, 1 }
  0x8d   :  { %647 = vmatpush.msrb.mxu1 %v580_v34  ;;  %667 = vmatpush.msrb.mxu3 %v612_v4 }
  0x8e   :  { %687 = vmatpush.msra.mxu0 %v581_v35  ;;  %707 = vmatpush.msra.mxu2 %v613_v22 }
  0x8f   :  { %648 = vmatpush.msrb.mxu1 %v578_v36  ;;  %668 = vmatpush.msrb.mxu3 %v610_v24 }
  0x90   :  { %688 = vmatpush.msra.mxu0 %v579_v37  ;;  %708 = vmatpush.msra.mxu2 %v611_v7 }
  0x91   :  { %649 = vmatpush.msrb.mxu1 %v576_v38  ;;  %669 = vmatpush.msrb.mxu3 %v608_v10 }
  0x92   :  { %689 = vmatpush.msra.mxu0 %v577_v39  ;;  %709 = vmatpush.msra.mxu2 %v609_v26 }
  0x93   :  { %650 = vmatpush.msrb.mxu1 %v574_v40  ;;  %670 = vmatpush.msrb.mxu3 %v606_v13 }
  0x94   :  { %690 = vmatpush.msra.mxu0 %v575_v41  ;;  %710 = vmatpush.msra.mxu2 %v607_v27 }
  0x95   :  { %651 = vmatpush.msrb.mxu1 %v572_v42  ;;  %671 = vmatpush.msrb.mxu3 %v604_v63 }
  0x96   :  { %691 = vmatpush.msra.mxu0 %v573_v43  ;;  %711 = vmatpush.msra.mxu2 %v605_v28 }
  0x97   :  { %652 = vmatpush.msrb.mxu1 %v570_v44  ;;  %672 = vmatpush.msrb.mxu3 %v602_v29 }
  0x98   :  { %692 = vmatpush.msra.mxu0 %v571_v45  ;;  %712 = vmatpush.msra.mxu2 %v603_v30 }
  0x99   :  { %653 = vmatpush.msrb.mxu1 %v568_v46  ;;  %673 = vmatpush.msrb.mxu3 %v600_v31 }
  0x9a   :  { %693 = vmatpush.msra.mxu0 %v569_v47  ;;  %713 = vmatpush.msra.mxu2 %v601_v32 }
  0xb4   :  { %v303_v58 = vpop.f32.mrf.mxu0 }
  0xb5   :  { %v304_v61 = vadd.f32 %v303_v58, %v278_v55 }
  0xb8   :  { %v323_v1 = vpop.f32.mrf.mxu1  ;;  %v343_v6 = vpop.f32.mrf.mxu2 }
  0xb9   :  { %v324_v5 = vadd.f32 %v323_v1, %v304_v61  ;;  %v722_v61 = vperm.slane %v720_v54, 0 }
  0xbb   :  { %v344_v8 = vadd.f32 %v343_v6, %v324_v5  ;;  %v363_v9 = vpop.f32.mrf.mxu3  ;;  %v771_v6 = vld [vmem:[#allocation2] ss:$0 sm:$0xff] }
  0xbd   :  { %v364_v12 = vadd.f32 %v363_v9, %v344_v8 }
  0xd0   :  { %v383_v11 = vpop.f32.mrf.mxu0 }
  0xd1   :  { %v384_v16 = vadd.f32 %v383_v11, %v364_v12 }
  0xd3   :  { %v403_v18 = vpop.f32.mrf.mxu1 }
  0xd4   :  { %v404_v20 = vadd.f32 %v403_v18, %v384_v16  ;;  %v423_v21 = vpop.f32.mrf.mxu2 }
  0xd6   :  { %v424_v23 = vadd.f32 %v423_v21, %v404_v20 }
  0xd8   :  { %v566_v25 = vmax.f32 %v424_v23, 0.0 }
  0xda   :  { %654 = vmatmul.f32.vlgmr.msrb.gmra.mxu1 %v566_v25  ;;  %694 = vmatmul.f32.vlgmr.msra.gmra.mxu0 %v566_v25 }
  0xee   :  { %v443_v34 = vpop.f32.mrf.mxu3 }
  0xef   :  { %v444_v35 = vadd.f32 %v443_v34, %v279_v33 }
  0xf1   :  { %v463_v36 = vpop.f32.mrf.mxu2 }
  0xf2   :  { %v464_v37 = vadd.f32 %v463_v36, %v444_v35 }
  0xf4   :  { %v483_v38 = vpop.f32.mrf.mxu0 }
  0xf5   :  { %v484_v39 = vadd.f32 %v483_v38, %v464_v37 }
  0xf7   :  { %v503_v40 = vpop.f32.mrf.mxu1 }
  0xf8   :  { %v504_v41 = vadd.f32 %v503_v40, %v484_v39  ;;  %v523_v42 = vpop.f32.mrf.mxu3 }
  0xfa   :  { %v524_v43 = vadd.f32 %v523_v42, %v504_v41 }
  0xfb   :  { %v543_v44 = vpop.f32.mrf.mxu2 }
  0xfc   :  { %v544_v45 = vadd.f32 %v543_v44, %v524_v43  ;;  %v563_v46 = vpop.f32.mrf.mxu0 }
  0xfe   :  { %v564_v47 = vadd.f32 %v563_v46, %v544_v45 }
 0x100   :  { %v567_v48 = vmax.f32 %v564_v47, 0.0 }
 0x102   :  { %674 = vmatmul.f32.vlgmr.msrb.gmra.mxu3 %v567_v48  ;;  %714 = vmatmul.f32.vlgmr.msra.gmra.mxu2 %v567_v48 }
 0x157   :  { %v655_v52 = vpop.f32.mrf.mxu1  ;;  %v695_v53 = vpop.f32.mrf.mxu0 }
 0x158   :  { %v656_v55 = vadd.f32 %v655_v52, %v634_v50  ;;  %v696_v56 = vadd.f32 %v695_v53, %v635_v51 }
 0x185   :  { %v675_v57 = vpop.f32.mrf.mxu3  ;;  %v715_v58 = vpop.f32.mrf.mxu2 }
 0x186   :  { %v676_v59 = vadd.f32 %v675_v57, %v656_v55  ;;  %v716_v60 = vadd.f32 %v715_v58, %v696_v56 }
 0x188   :  { %v718_v0 = vmax.f32 %v676_v59, 0.0  ;;  %v719_v1 = vmax.f32 %v716_v60, 0.0 }
 0x18a   :  { %v726_v2 = vmul.f32 %v722_v61, %v718_v0  ;;  %v727_v3 = vmul.f32 %v723_v62, %v719_v1 }
 0x18c   :  { %v728_v5 = vadd.f32 %v727_v3, %v726_v2 }
 0x18e   :  { %729 = vadd.xlane.f32.xlu0 %v728_v5 }
 0x201   :  { %v730_v8 = vpop.xlane.xlu0 %729 }
 0x202   :  { %v735_v9 = vadd.f32 %v771_v6, %v730_v8 }
 0x204   :  { %v765_v12 = vmul.f32 -1.442695, %v735_v9 }
 0x206   :  { %772 = vpow2.f32 %v765_v12 }
 0x20c   :  { %v773_v11 = vpop.eup %772 }
 0x20d   :  { %v739_v14 = vadd.f32 1.0, %v773_v11 }
 0x20f   :  { %774 = vrcp.f32 %v739_v14  ;;  %v751_v17 = vand.u32 2147483648, %v739_v14  ;;  %v749_v20 = vand.u32 2147483647, %v739_v14  ;;  %vm745_vm2 = vweird.f32 %v739_v14 }
 0x211   :  { %v752_v4 = vor.u32 1.1754944e-38, %v751_v17  ;;  %vm750_vm5 = vcmp.eq.f32.partialorder %v749_v20, 8.507059e+37 }
 0x215   :  { %v775_v15 = vpop.eup %774 }
 0x216   :  { %v741_v16 = vmul.f32 %v775_v15, %v739_v14  ;;  %vm746_vm1 = vweird.f32 %v775_v15 }
 0x217   :  { %vm747_vm3 = vmor %vm745_vm2, %vm746_vm1 }
 0x218   :  { %v742_v19 = vsub.f32 1.0, %v741_v16 }
 0x21a   :  { %v743_v18 = vmul.f32 %v775_v15, %v742_v19 }
 0x21c   :  { %v744_v21 = vadd.f32 %v775_v15, %v743_v18 }
 0x21e   :  { %v748_v22 = vsel %vm747_vm3, %v775_v15, %v744_v21 }
 0x21f   :  { %v753_v23 = vsel %vm750_vm5, %v752_v4, %v748_v22 }
 0x220   :  { %756 = vst.msk [vmem:[%s962_s7] sm:$0xff] %vm755_vm4, %v753_v23 }
 0x221   :  { %761 = vsyncpa [#allocation4], 1 }
 0x222   :  { %762 = vsyncpa [#allocation6], 1 }

</bundles_post_ra>
